<compile_context>
chip_gen: v6e
topology: v6e:2x2x1
jax: 0.10.0
libtpu: 0.0.40
codegen_flags: <defaults>
</compile_context>

<pallas_src>
import jax
import jax.numpy as jnp
from jax import lax
from jax.experimental import pallas as pl
from jax.experimental.pallas import tpu as pltpu

B, C, H, W = 2, 4, 16, 16      # small synthetic shapes (batch, coils, spatial)
P = H * W                      # pixels on the lane axis
C2 = 2 * C                     # packed real+imag coil rows (sublane axis)
HID = 32                       # hidden width of the per-pixel refinement MLP
EPS = 1e-8


def stage1_kernel(k_ref, m_ref, p_ref, out_ref):
    """One batch-chunk. k_ref/out_ref: [2C, L] (rows 0..C-1 real, C..2C-1 imag)."""
    k = k_ref[...]                              # [2C, L] packed k-space
    m = m_ref[...]                              # [1,  L] sampling mask (0/1)
    prm = p_ref[...]                            # [pack_rows, 2C] packed params
    wmix = prm[0:C2, :]                         # [2C, 2C] fused complex coil-mix
    wcol = prm[C2:C2 + HID, :]                  # [HID, 2C]: cols = w1c0,w1c1,w2r0,w2r1
    dcv = prm[C2 + HID:C2 + HID + 1, 0:1]       # [1, 1] data-consistency weight

    # ---------------- sens_net: coil mixing + RSS normalization ----------------
    # TODO(synk): the real sens_net applies an inverse 2D FFT / ACS extraction
    # (driven by mask.int()) before sensitivity estimation; FFT has no clean
    # Pallas equivalent, so a learned complex 1x1 coil mixing stands in for it.
    x = jnp.dot(wmix, k, preferred_element_type=jnp.float32)          # [2C, L]
    rinv = lax.rsqrt(jnp.sum(x * x, axis=0, keepdims=True) + EPS)     # one EUP rsqrt
    s = x * rinv                                                      # sens maps [2C, L]

    sr, si = s[0:C, :], s[C:C2, :]
    kr, ki = k[0:C, :], k[C:C2, :]

    # ---------------- model: reduce -> refine (MLP) -> expand -> DC ------------
    # sens_reduce: sum_c conj(S_c) * k_c
    cr = jnp.sum(sr * kr + si * ki, axis=0, keepdims=True)            # [1, L]
    ci = jnp.sum(sr * ki - si * kr, axis=0, keepdims=True)            # [1, L]

    # per-pixel MLP on the (real, imag) pair — shapes are far too small for the
    # MXU, so run it as VPU broadcast-FMAs plus one sublane reduction.
    hmid = jnp.maximum(wcol[:, 0:1] * cr + wcol[:, 1:2] * ci, 0.0)    # [HID, L]
    rr = jnp.sum(wcol[:, 2:3] * hmid, axis=0, keepdims=True)          # [1, L]
    ri = jnp.sum(wcol[:, 3:4] * hmid, axis=0, keepdims=True)          # [1, L]

    # sens_expand + soft data consistency (mask*dc hoisted to one [1,L] product)
    er = sr * rr - si * ri                                            # [C, L]
    ei = sr * ri + si * rr
    mdc = m * dcv
    out_ref[...] = k - mdc * jnp.concatenate([er, ei], axis=0)        # full-tile store


def _multi_tc():
    """True on chips with 2 TensorCores per device (v4/v5p megacore, v7x)."""
    try:
        kind = jax.devices()[0].device_kind.lower()
    except Exception:
        return False
    return any(t in kind for t in ("v7", "tpu7", "v4", "v5p"))


def stage1_engine(masked_kspace, mask, params):
    """masked_kspace: [B, C, H, W, 2] f32, mask: [B, 1, 1, W, 1] f32 (0/1)."""
    wsr, wsi, w1, w2, dc = params
    b, c, h, w, _ = masked_kspace.shape
    p = h * w
    c2 = 2 * c

    # glue: interleaved complex NCHW -> planar [B, 2C, P] (real rows then imag rows)
    kr = masked_kspace[..., 0].reshape(b, c, p)
    ki = masked_kspace[..., 1].reshape(b, c, p)
    kpack = jnp.concatenate([kr, ki], axis=1)                 # [B, 2C, P]
    mf = mask.astype(jnp.int32).astype(jnp.float32)           # mirrors `mask.int()`
    m = jnp.broadcast_to(mf[:, :, :, :, 0], (b, 1, h, w)).reshape(b, 1, p)

    # glue: coalesce all tiny parameters into ONE packed VMEM block (single DMA)
    wmix = jnp.concatenate(
        [jnp.concatenate([wsr, -wsi], axis=1),
         jnp.concatenate([wsi, wsr], axis=1)], axis=0)        # [2C, 2C]
    wcol = jnp.stack([w1[:, 0], w1[:, 1], w2[0, :], w2[1, :]], axis=1)  # [HID, 4]
    wcol = jnp.pad(wcol, ((0, 0), (0, c2 - 4)))               # [HID, 2C]
    dcrow = jnp.zeros((1, c2), jnp.float32).at[0, 0].set(dc[0])
    packed = jnp.concatenate([wmix, wcol, dcrow], axis=0)     # [2C+HID+1, 2C]
    pack_rows = ((packed.shape[0] + 7) // 8) * 8
    packed = jnp.pad(packed, ((0, pack_rows - packed.shape[0]), (0, 0)))

    if _multi_tc():
        # dual-TC chips (v7x / megacore): keep a parallel batch grid so the two
        # TensorCores each take a batch iteration.
        out3 = pl.pallas_call(
            stage1_kernel,
            grid=(b,),
            in_specs=[
                pl.BlockSpec((None, c2, p), lambda i: (i, 0, 0)),   # packed k-space
                pl.BlockSpec((None, 1, p), lambda i: (i, 0, 0)),    # mask
                pl.BlockSpec((pack_rows, c2), lambda i: (0, 0)),    # packed params
            ],
            out_specs=pl.BlockSpec((None, c2, p), lambda i: (i, 0, 0)),
            out_shape=jax.ShapeDtypeStruct((b, c2, p), jnp.float32),
            compiler_params=pltpu.CompilerParams(
                dimension_semantics=("parallel",)),
        )(kpack, m, packed)
    else:
        # single-TC chips (v5e / v6e): fold batch into the lane axis -> one
        # invocation on a lane-dense [2C, B*P] tile, no per-step grid overhead.
        k2d = jnp.transpose(kpack, (1, 0, 2)).reshape(c2, b * p)
        m2d = jnp.transpose(m, (1, 0, 2)).reshape(1, b * p)
        out2d = pl.pallas_call(
            stage1_kernel,
            grid=(1,),
            in_specs=[
                pl.BlockSpec((c2, b * p), lambda i: (0, 0)),
                pl.BlockSpec((1, b * p), lambda i: (0, 0)),
                pl.BlockSpec((pack_rows, c2), lambda i: (0, 0)),
            ],
            out_specs=pl.BlockSpec((c2, b * p), lambda i: (0, 0)),
            out_shape=jax.ShapeDtypeStruct((c2, b * p), jnp.float32),
            compiler_params=pltpu.CompilerParams(
                dimension_semantics=("arbitrary",)),
        )(k2d, m2d, packed)
        out3 = jnp.transpose(out2d.reshape(c2, b, p), (1, 0, 2))    # [B, 2C, P]

    # glue: planar [B, 2C, P] -> torch layout [B, C, H, W, 2]
    # TODO(synk): consumers that accept planar real/imag output could skip this restack.
    return jnp.stack([out3[:, :c, :], out3[:, c:, :]], axis=-1).reshape(b, c, h, w, 2)


def reference(masked_kspace, mask, params):
    """Pure-jnp reference of the same math, for correctness checking."""
    wsr, wsi, w1, w2, dc = params
    b, c, h, w, _ = masked_kspace.shape
    p = h * w
    kr = masked_kspace[..., 0].reshape(b, c, p)
    ki = masked_kspace[..., 1].reshape(b, c, p)
    mf = mask.astype(jnp.int32).astype(jnp.float32)
    m = jnp.broadcast_to(mf[:, :, :, :, 0], (b, 1, h, w)).reshape(b, 1, p)
    xr = jnp.einsum('oc,bcp->bop', wsr, kr) - jnp.einsum('oc,bcp->bop', wsi, ki)
    xi = jnp.einsum('oc,bcp->bop', wsr, ki) + jnp.einsum('oc,bcp->bop', wsi, kr)
    rinv = lax.rsqrt(jnp.sum(xr ** 2 + xi ** 2, axis=1, keepdims=True) + EPS)
    sr, si = xr * rinv, xi * rinv
    cr = jnp.sum(sr * kr + si * ki, axis=1, keepdims=True)
    ci = jnp.sum(sr * ki - si * kr, axis=1, keepdims=True)
    hmid = jnp.maximum(w1[:, 0][None, :, None] * cr + w1[:, 1][None, :, None] * ci, 0.0)
    rr = jnp.sum(w2[0][None, :, None] * hmid, axis=1, keepdims=True)
    ri = jnp.sum(w2[1][None, :, None] * hmid, axis=1, keepdims=True)
    er = sr * rr - si * ri
    ei = sr * ri + si * rr
    outr = kr - m * dc[0] * er
    outi = ki - m * dc[0] * ei
    return jnp.stack([outr, outi], axis=-1).reshape(b, c, h, w, 2)


if __name__ == "__main__":
    key = jax.random.PRNGKey(0)
    k1, k2, k3, k4, k5, k6 = jax.random.split(key, 6)

    # deterministic synthetic inputs (fastMRI-style column-sampled k-space)
    full_kspace = jax.random.normal(k1, (B, C, H, W, 2), jnp.float32)
    mask = (jax.random.uniform(k2, (B, 1, 1, W, 1)) < 0.5).astype(jnp.float32)
    masked_kspace = full_kspace * mask

    # deterministic synthetic parameters
    wsr = 0.3 * jax.random.normal(k3, (C, C), jnp.float32)
    wsi = 0.3 * jax.random.normal(k4, (C, C), jnp.float32)
    w1 = 0.3 * jax.random.normal(k5, (HID, 2), jnp.float32)
    w2 = 0.3 * jax.random.normal(k6, (2, HID), jnp.float32)
    dc = jnp.array([0.5], jnp.float32)
    params = (wsr, wsi, w1, w2, dc)

    out = stage1_engine(masked_kspace, mask, params)
    out = jax.block_until_ready(out)

    ref = reference(masked_kspace, mask, params)
    assert out.shape == masked_kspace.shape and out.dtype == jnp.float32
    max_err = float(jnp.max(jnp.abs(out - ref)))
    assert jnp.allclose(out, ref, atol=5e-3, rtol=5e-3), max_err
    print("KERNEL_OK")
</pallas_src>

<mosaic_0001>
module attributes {stable_mosaic.version = 11 : i64} {
  func.func @stage1_kernel(%arg0: i32, %arg1: memref<8x512xf32, #tpu.memory_space<vmem>>, %arg2: memref<1x512xf32, #tpu.memory_space<vmem>>, %arg3: memref<48x8xf32, #tpu.memory_space<vmem>>, %arg4: memref<8x512xf32, #tpu.memory_space<vmem>>) attributes {dimension_semantics = [#tpu.dimension_semantics<arbitrary>], iteration_bounds = array<i64: 1>, scalar_prefetch = 0 : i64, scratch_operands = 0 : i64, tpu.core_type = #tpu.core_type<tc>, window_params = [{pipeline_mode = #tpu.pipeline_mode<synchronous>, transform_indices = @transform_0, window_bounds = array<i64: 8, 512>}, {pipeline_mode = #tpu.pipeline_mode<synchronous>, transform_indices = @transform_1, window_bounds = array<i64: 1, 512>}, {pipeline_mode = #tpu.pipeline_mode<synchronous>, transform_indices = @transform_2, window_bounds = array<i64: 48, 8>}, {pipeline_mode = #tpu.pipeline_mode<synchronous>, transform_indices = @transform_3, window_bounds = array<i64: 8, 512>}]} {
    %c0 = arith.constant 0 : index
    %c0_0 = arith.constant 0 : index
    %0 = vector.load %arg1[%c0, %c0_0] : memref<8x512xf32, #tpu.memory_space<vmem>>, vector<8x512xf32>
    %c0_1 = arith.constant 0 : index
    %c0_2 = arith.constant 0 : index
    %1 = vector.load %arg2[%c0_1, %c0_2] : memref<1x512xf32, #tpu.memory_space<vmem>>, vector<1x512xf32>
    %c0_3 = arith.constant 0 : index
    %c0_4 = arith.constant 0 : index
    %2 = vector.load %arg3[%c0_3, %c0_4] : memref<48x8xf32, #tpu.memory_space<vmem>>, vector<48x8xf32>
    %3 = vector.extract_strided_slice %2 {offsets = [0, 0], sizes = [8, 8], strides = [1, 1]} : vector<48x8xf32> to vector<8x8xf32>
    %4 = vector.extract_strided_slice %2 {offsets = [8, 0], sizes = [32, 8], strides = [1, 1]} : vector<48x8xf32> to vector<32x8xf32>
    %5 = vector.extract_strided_slice %2 {offsets = [40, 0], sizes = [1, 1], strides = [1, 1]} : vector<48x8xf32> to vector<1x1xf32>
    %cst = arith.constant dense<0.000000e+00> : vector<8x512xf32>
    %6 = tpu.matmul %3, %0, %cst {dimension_numbers = #tpu.dot_dimension_numbers<[1], [0], [0], [1], [0, 0, 1, 1], [], []>} : vector<8x8xf32>, vector<8x512xf32>, vector<8x512xf32> -> vector<8x512xf32>
    %7 = arith.mulf %6, %6 : vector<8x512xf32>
    %cst_5 = arith.constant dense<0.000000e+00> : vector<512xf32>
    %8 = vector.multi_reduction <add>, %7, %cst_5 [0] : vector<8x512xf32> to vector<512xf32>
    %9 = vector.shape_cast %8 : vector<512xf32> to vector<1x512xf32>
    %cst_6 = arith.constant 9.99999993E-9 : f32
    %10 = vector.broadcast %cst_6 : f32 to vector<1x512xf32>
    %11 = arith.addf %9, %10 : vector<1x512xf32>
    %12 = math.rsqrt %11 : vector<1x512xf32>
    %13 = vector.broadcast %12 : vector<1x512xf32> to vector<8x512xf32>
    %14 = arith.mulf %6, %13 : vector<8x512xf32>
    %15 = vector.extract_strided_slice %14 {offsets = [0, 0], sizes = [4, 512], strides = [1, 1]} : vector<8x512xf32> to vector<4x512xf32>
    %16 = vector.extract_strided_slice %14 {offsets = [4, 0], sizes = [4, 512], strides = [1, 1]} : vector<8x512xf32> to vector<4x512xf32>
    %17 = vector.extract_strided_slice %0 {offsets = [0, 0], sizes = [4, 512], strides = [1, 1]} : vector<8x512xf32> to vector<4x512xf32>
    %18 = vector.extract_strided_slice %0 {offsets = [4, 0], sizes = [4, 512], strides = [1, 1]} : vector<8x512xf32> to vector<4x512xf32>
    %19 = arith.mulf %15, %17 : vector<4x512xf32>
    %20 = arith.mulf %16, %18 : vector<4x512xf32>
    %21 = arith.addf %19, %20 : vector<4x512xf32>
    %cst_7 = arith.constant dense<0.000000e+00> : vector<512xf32>
    %22 = vector.multi_reduction <add>, %21, %cst_7 [0] : vector<4x512xf32> to vector<512xf32>
    %23 = vector.shape_cast %22 : vector<512xf32> to vector<1x512xf32>
    %24 = arith.mulf %15, %18 : vector<4x512xf32>
    %25 = arith.mulf %16, %17 : vector<4x512xf32>
    %26 = arith.subf %24, %25 : vector<4x512xf32>
    %cst_8 = arith.constant dense<0.000000e+00> : vector<512xf32>
    %27 = vector.multi_reduction <add>, %26, %cst_8 [0] : vector<4x512xf32> to vector<512xf32>
    %28 = vector.shape_cast %27 : vector<512xf32> to vector<1x512xf32>
    %29 = vector.extract_strided_slice %4 {offsets = [0, 0], sizes = [32, 1], strides = [1, 1]} : vector<32x8xf32> to vector<32x1xf32>
    %30 = vector.broadcast %29 : vector<32x1xf32> to vector<32x512xf32>
    %31 = vector.broadcast %23 : vector<1x512xf32> to vector<32x512xf32>
    %32 = arith.mulf %30, %31 : vector<32x512xf32>
    %33 = vector.extract_strided_slice %4 {offsets = [0, 1], sizes = [32, 1], strides = [1, 1]} : vector<32x8xf32> to vector<32x1xf32>
    %34 = vector.broadcast %33 : vector<32x1xf32> to vector<32x512xf32>
    %35 = vector.broadcast %28 : vector<1x512xf32> to vector<32x512xf32>
    %36 = arith.mulf %34, %35 : vector<32x512xf32>
    %37 = arith.addf %32, %36 : vector<32x512xf32>
    %cst_9 = arith.constant 0.000000e+00 : f32
    %38 = vector.broadcast %cst_9 : f32 to vector<32x512xf32>
    %39 = arith.maximumf %37, %38 : vector<32x512xf32>
    %40 = vector.extract_strided_slice %4 {offsets = [0, 2], sizes = [32, 1], strides = [1, 1]} : vector<32x8xf32> to vector<32x1xf32>
    %41 = vector.broadcast %40 : vector<32x1xf32> to vector<32x512xf32>
    %42 = arith.mulf %41, %39 : vector<32x512xf32>
    %cst_10 = arith.constant dense<0.000000e+00> : vector<512xf32>
    %43 = vector.multi_reduction <add>, %42, %cst_10 [0] : vector<32x512xf32> to vector<512xf32>
    %44 = vector.shape_cast %43 : vector<512xf32> to vector<1x512xf32>
    %45 = vector.extract_strided_slice %4 {offsets = [0, 3], sizes = [32, 1], strides = [1, 1]} : vector<32x8xf32> to vector<32x1xf32>
    %46 = vector.broadcast %45 : vector<32x1xf32> to vector<32x512xf32>
    %47 = arith.mulf %46, %39 : vector<32x512xf32>
    %cst_11 = arith.constant dense<0.000000e+00> : vector<512xf32>
    %48 = vector.multi_reduction <add>, %47, %cst_11 [0] : vector<32x512xf32> to vector<512xf32>
    %49 = vector.shape_cast %48 : vector<512xf32> to vector<1x512xf32>
    %50 = vector.broadcast %44 : vector<1x512xf32> to vector<4x512xf32>
    %51 = arith.mulf %15, %50 : vector<4x512xf32>
    %52 = vector.broadcast %49 : vector<1x512xf32> to vector<4x512xf32>
    %53 = arith.mulf %16, %52 : vector<4x512xf32>
    %54 = arith.subf %51, %53 : vector<4x512xf32>
    %55 = vector.broadcast %49 : vector<1x512xf32> to vector<4x512xf32>
    %56 = arith.mulf %15, %55 : vector<4x512xf32>
    %57 = vector.broadcast %44 : vector<1x512xf32> to vector<4x512xf32>
    %58 = arith.mulf %16, %57 : vector<4x512xf32>
    %59 = arith.addf %56, %58 : vector<4x512xf32>
    %60 = vector.broadcast %5 : vector<1x1xf32> to vector<1x512xf32>
    %61 = arith.mulf %1, %60 : vector<1x512xf32>
    %62 = tpu.concatenate %54, %59 in 0 : vector<4x512xf32>, vector<4x512xf32> -> vector<8x512xf32>
    %63 = vector.broadcast %61 : vector<1x512xf32> to vector<8x512xf32>
    %64 = arith.mulf %63, %62 : vector<8x512xf32>
    %65 = arith.subf %0, %64 : vector<8x512xf32>
    %c0_12 = arith.constant 0 : index
    %c0_13 = arith.constant 0 : index
    %66 = vector.load %arg4[%c0_12, %c0_13] : memref<8x512xf32, #tpu.memory_space<vmem>>, vector<8x512xf32>
    tpu.vector_store %arg4[%c0_12, %c0_13], %65 {strides = array<i32>} : memref<8x512xf32, #tpu.memory_space<vmem>>, vector<8x512xf32>,
    return
  }
  func.func @transform_0(%arg0: i32) -> (i32, i32) {
    %c0_i32 = arith.constant 0 : i32
    %c0_i32_0 = arith.constant 0 : i32
    %c0_i32_1 = arith.constant 0 : i32
    return %c0_i32, %c0_i32_0 : i32, i32
  }
  func.func @transform_1(%arg0: i32) -> (i32, i32) {
    %c0_i32 = arith.constant 0 : i32
    %c0_i32_0 = arith.constant 0 : i32
    %c0_i32_1 = arith.constant 0 : i32
    return %c0_i32, %c0_i32_0 : i32, i32
  }
  func.func @transform_2(%arg0: i32) -> (i32, i32) {
    %c0_i32 = arith.constant 0 : i32
    %c0_i32_0 = arith.constant 0 : i32
    %c0_i32_1 = arith.constant 0 : i32
    return %c0_i32, %c0_i32_0 : i32, i32
  }
  func.func @transform_3(%arg0: i32) -> (i32, i32) {
    %c0_i32 = arith.constant 0 : i32
    %c0_i32_0 = arith.constant 0 : i32
    %c0_i32_1 = arith.constant 0 : i32
    return %c0_i32, %c0_i32_0 : i32, i32
  }
}

</mosaic_0001>

<bundles_post_ra>
// kernel: tpu_custom_call.1
= control target key start
LH: loop header
LB: loop body
LE: loop exit
PB: predicated region body
PF: predicated region fallthrough
CT: control target
= control target key end

     0   :  { %vm26_vm0 = vcmask 64512   ;;  %v717_v5 = vmov 0.0   ;;  %s935_s0 = inlined_call_operand.vmem [shape: f32[8,512], index: 0, kind: input, shape index: {}]   ;;  %s936_s1 = inlined_call_operand.vmem [shape: f32[1,512], index: 1, kind: input, shape index: {}]   ;;  %s937_s2 = inlined_call_operand.vmem [shape: f32[48,8], index: 2, kind: input, shape index: {}]   ;;  %s938_s3 = inlined_call_operand.hbm [shape: f32[8,512], index: 3, kind: output, shape index: {}]  }
   0x1   :  { %v746_v0 = vld [vmem:[%s935_s0 + $0x8] sm:$0xff]  ;;  %v751_v1 = vld [vmem:[%s935_s0 + $0x18] sm:$0xff]  ;;  %v756_v2 = vld [vmem:[%s935_s0] sm:$0xff]  ;;  %94 = vmatprep.mubr.f32.mxu0 %v717_v5  ;;  %165 = vmatprep.mubr.f32.mxu1 %v717_v5 }
   0x2   :  { %60 = vmatprep.subr.mxu0 %v746_v0  ;;  %131 = vmatprep.subr.mxu1 %v751_v1  ;;  %v763_v3 = vld [vmem:[%s935_s0 + $0x10] sm:$0xff]  ;;  %v20_v4 = vld [vmem:[%s937_s2] sm:$0xff]  ;;  %v21_v6 = vld [vmem:[%s937_s2 + $0x8] sm:$0xff] }
   0x3   :  { %61 = vmatpush1.msra.mxu0 %v756_v2  ;;  %132 = vmatpush1.msra.mxu1 %v763_v3 }
   0x4   :  { %8 = vsyncpa [#allocation3], 0  ;;  %670 = vmatmul.mubr.msk.f32.vlgmr.msra.gmra.mxu0 %vm26_vm0, %v20_v4  ;;  %671 = vmatmul.mubr.msk.f32.vlgmr.msra.gmra.mxu1 %vm26_vm0, %v20_v4  ;;  %v718_v7 = vmov 1   ;;  %v719_v8 = vmov 0   ;;  %v22_v9 = vld [vmem:[%s937_s2 + $0x10] sm:$0xff]  ;;  %v23_v10 = vld [vmem:[%s937_s2 + $0x18] sm:$0xff]  ;;  %v601_v57 = vlaneseq }
   0x5   :  { %679 = vset.pattern.permute.xlu1 %v718_v7  ;;  %678 = vset.pattern.permute.xlu0 %v719_v8  ;;  %v24_v11 = vld [vmem:[%s937_s2 + $0x20] sm:$0xff]  ;;  %v720_v12 = vmov 2   ;;  %v721_v13 = vmov 3   ;;  %v25_v14 = vld [vmem:[%s937_s2 + $0x28] sm:$0xff]  ;;  %v265_v62 = vrot.slane %v756_v2, 4  ;;  %v267_v4 = vrot.slane %v763_v3, 4 }
   0x6   :  { %358 = vperm.xlu1 %679, %v21_v6   ;;  %323 = vperm.xlu0 %678, %v21_v6   ;;  %v801_v58 = vshrl.u32 %v601_v57, 7  ;;  %v266_v7 = vrot.slane %v746_v0, 4  ;;  %vm232_vm1 = vcmask 1043456  }
   0x8   :  { %v603_v60 = vsub.s32 0, %v801_v58 }
   0xa   :  { %362 = vperm.xlu1 %679, %v22_v9   ;;  %328 = vperm.xlu0 %678, %v22_v9  }
   0xe   :  { %366 = vperm.xlu1 %679, %v23_v10   ;;  %333 = vperm.xlu0 %678, %v23_v10  }
  0x12   :  { %370 = vperm.xlu1 %679, %v24_v11   ;;  %338 = vperm.xlu0 %678, %v24_v11  }
  0x16   :  { %681 = vset.pattern.permute.xlu1 %v720_v12  ;;  %680 = vset.pattern.permute.xlu0 %v720_v12 }
  0x17   :  { %426 = vperm.xlu1 %681, %v22_v9   ;;  %422 = vperm.xlu0 %680, %v21_v6  }
  0x1b   :  { %430 = vperm.xlu1 %681, %v23_v10   ;;  %682 = vset.pattern.permute.xlu0 %v721_v13 }
  0x1c   :  { %490 = vperm.xlu0 %682, %v21_v6  }
  0x1f   :  { %683 = vset.pattern.permute.xlu1 %v721_v13 }
  0x20   :  { %494 = vperm.xlu1 %683, %v22_v9   ;;  %498 = vperm.xlu0 %682, %v23_v10  }
  0x24   :  { %684 = vset.pattern.permute.xlu1 %v720_v12  ;;  %686 = vset.pattern.permute.xlu0 %v719_v8  ;;  %v268_v8 = vrot.slane %v751_v1, 4 }
  0x25   :  { %434 = vperm.xlu1 %684, %v24_v11   ;;  %599 = vperm.xlu0 %686, %v25_v14   ;;  %v630_v14 = vsub.s32 1, %v801_v58 }
  0x29   :  { %685 = vset.pattern.permute.xlu1 %v721_v13 }
  0x2a   :  { %502 = vperm.xlu1 %685, %v24_v11   ;;  %v19_v11 = vld [vmem:[%s936_s1] sm:$0xf]  ;;  %s722_s1 = smov [#allocation2]  }
  0x2b   :  { %s662_s5 = sshll.u32 %s722_s1, 4  ;;  %s663_s5 = int_to_ptr.vmem [resolvable:$true] %s662_s5 }
  0x2c   :  { %s695_s6 = scalar_lea.vmem %s663_s5, 512  ;;  %p700_p1 = scmp.lt.s32.totalorder %s663_s5, %s663_s5 }
  0x2d   :  { %p696_p0 = scmp.ne.s32.totalorder %s663_s5, %s695_s6  ;;  %p701_p2 = scmp.lt.s32.totalorder %s695_s6, %s695_s6 }
  0x2f   :  { %p702_p3 = por %p701_p2, %p700_p1 }
  0x31   :  { %p703_p4 = pnand %p702_p3, %p696_p0 }
  0x81   :  { %v785_v15 = vpop.permute.xlu0 %323  ;;  %v814_v10 = vpop.permute.xlu1 %358 }
  0x85   :  { %v787_v16 = vpop.permute.xlu0 %328 }
  0x89   :  { %v789_v21 = vpop.permute.xlu0 %333 }
  0x8d   :  { %v795_v36 = vpop.permute.xlu0 %338 }
  0x92   :  { %v797_v45 = vpop.permute.xlu0 %422 }
  0x97   :  { %v799_v56 = vpop.permute.xlu0 %490 }
  0x9b   :  { %v803_v59 = vpop.permute.xlu0 %498 }
  0xa0   :  { %v600_v61 = vpop.permute.xlu0 %599 }
  0xa1   :  { %v604_v5 = vrot.slane %v600_v61, %v603_v60 }
  0xc4   :  { %v96_v17 = vpop.f32.mrf.mxu0  ;;  %v167_v18 = vpop.f32.mrf.mxu1 }
  0xc5   :  { %v172_v19 = vmul.f32 %v96_v17, %v96_v17  ;;  %v174_v20 = vmul.f32 %v167_v18, %v167_v18 }
  0xc6   :  { %v98_v22 = vpop.f32.mrf.mxu0  ;;  %v791_v23 = vpop.f32.mrf.mxu1 }
  0xc7   :  { %v176_v24 = vrot.slane %v172_v19, 4  ;;  %v188_v25 = vrot.slane %v174_v20, 4  ;;  %v173_v26 = vmul.f32 %v98_v22, %v98_v22  ;;  %v175_v27 = vmul.f32 %v791_v23, %v791_v23 }
  0xc9   :  { %v177_v28 = vadd.f32 %v176_v24, %v172_v19  ;;  %v189_v29 = vadd.f32 %v188_v25, %v174_v20  ;;  %v182_v30 = vrot.slane %v173_v26, 4  ;;  %v194_v31 = vrot.slane %v175_v27, 4 }
  0xca   :  { %v634_v19 = vsub.s32 2, %v801_v58 }
  0xcb   :  { %v178_v32 = vrot.slane %v177_v28, 2  ;;  %v190_v33 = vrot.slane %v189_v29, 2  ;;  %v183_v34 = vadd.f32 %v182_v30, %v173_v26  ;;  %v195_v35 = vadd.f32 %v194_v31, %v175_v27 }
  0xcc   :  { %v638_v26 = vsub.s32 3, %v801_v58 }
  0xcd   :  { %v179_v37 = vadd.f32 %v178_v32, %v177_v28  ;;  %v191_v38 = vadd.f32 %v190_v33, %v189_v29  ;;  %v184_v39 = vrot.slane %v183_v34, 2  ;;  %v196_v40 = vrot.slane %v195_v35, 2 }
  0xce   :  { %v835_v29 = vmul.f32 %v604_v5, %v19_v11 }
  0xcf   :  { %v180_v41 = vrot.slane %v179_v37, 1  ;;  %v192_v42 = vrot.slane %v191_v38, 1  ;;  %v185_v43 = vadd.f32 %v184_v39, %v183_v34  ;;  %v197_v44 = vadd.f32 %v196_v40, %v195_v35 }
  0xd1   :  { %v181_v46 = vadd.f32 %v180_v41, %v179_v37  ;;  %v193_v47 = vadd.f32 %v192_v42, %v191_v38  ;;  %v186_v48 = vrot.slane %v185_v43, 1  ;;  %v198_v49 = vrot.slane %v197_v44, 1  ;;  %v843_v41 = vpop.permute.xlu1 %362 }
  0xd3   :  { %v200_v50 = vadd.f32 1e-08, %v181_v46  ;;  %v202_v51 = vadd.f32 1e-08, %v193_v47  ;;  %v187_v52 = vadd.f32 %v186_v48, %v185_v43  ;;  %v199_v53 = vadd.f32 %v198_v49, %v197_v44 }
  0xd5   :  { %687 = vrsqrt.f32 %v200_v50  ;;  %v201_v54 = vadd.f32 1e-08, %v187_v52  ;;  %v203_v55 = vadd.f32 1e-08, %v199_v53 }
  0xd6   :  { %689 = vrsqrt.f32 %v202_v51 }
  0xd7   :  { %691 = vrsqrt.f32 %v201_v54 }
  0xd8   :  { %693 = vrsqrt.f32 %v203_v55 }
  0xe2   :  { %v688_v63 = vpop.eup %687 }
  0xe3   :  { %v690_v6 = vpop.eup %689  ;;  %v812_v9 = vmul.f32 %v688_v63, %v96_v17 }
  0xe4   :  { %v692_v12 = vpop.eup %691  ;;  %v819_v13 = vmul.f32 %v690_v6, %v167_v18 }
  0xe5   :  { %v694_v20 = vpop.eup %693  ;;  %v212_v24 = vmul.f32 %v812_v9, %v756_v2  ;;  %v273_v17 = vmul.f32 %v265_v62, %v812_v9  ;;  %v826_v25 = vmul.f32 %v692_v12, %v98_v22 }
  0xe6   :  { %v214_v27 = vmul.f32 %v819_v13, %v763_v3  ;;  %v275_v18 = vmul.f32 %v267_v4, %v819_v13  ;;  %v833_v28 = vmul.f32 %v694_v20, %v791_v23  ;;  %v367_v20 = vpop.permute.xlu1 %366 }
  0xe7   :  { %v220_v30 = vrot.slane %v212_v24, 4  ;;  %v281_v31 = vrot.slane %v273_v17, 4  ;;  %v213_v32 = vmul.f32 %v826_v25, %v746_v0  ;;  %v274_v22 = vmul.f32 %v266_v7, %v826_v25 }
  0xe8   :  { %v222_v33 = vrot.slane %v214_v27, 4  ;;  %v283_v34 = vrot.slane %v275_v18, 4  ;;  %v215_v35 = vmul.f32 %v833_v28, %v751_v1  ;;  %v276_v37 = vmul.f32 %v268_v8, %v833_v28 }
  0xe9   :  { %v228_v38 = vadd.f32 %v220_v30, %v212_v24  ;;  %v289_v39 = vsub.f32 %v273_v17, %v281_v31  ;;  %v221_v23 = vrot.slane %v213_v32, 4  ;;  %v282_v40 = vrot.slane %v274_v22, 4 }
  0xea   :  { %v230_v42 = vadd.f32 %v222_v33, %v214_v27  ;;  %v291_v43 = vsub.f32 %v275_v18, %v283_v34  ;;  %v223_v44 = vrot.slane %v215_v35, 4  ;;  %v284_v46 = vrot.slane %v276_v37, 4 }
  0xeb   :  { %v233_v47 = vsel %vm232_vm1, %v228_v38, 0.0  ;;  %v293_v48 = vsel %vm232_vm1, %v289_v39, 0.0  ;;  %v229_v49 = vadd.f32 %v221_v23, %v213_v32  ;;  %v290_v50 = vsub.f32 %v274_v22, %v282_v40 }
  0xec   :  { %v234_v51 = vrot.slane %v233_v47, 4  ;;  %v294_v52 = vrot.slane %v293_v48, 4  ;;  %v247_v53 = vsel %vm232_vm1, %v230_v42, 0.0  ;;  %v307_v54 = vsel %vm232_vm1, %v291_v43, 0.0 }
  0xed   :  { %v248_v55 = vrot.slane %v247_v53, 4  ;;  %v308_v57 = vrot.slane %v307_v54, 4  ;;  %v240_v61 = vsel %vm232_vm1, %v229_v49, 0.0  ;;  %v300_v62 = vsel %vm232_vm1, %v290_v50, 0.0 }
  0xee   :  { %v235_v63 = vadd.f32 %v234_v51, %v233_v47  ;;  %v295_v4 = vadd.f32 %v294_v52, %v293_v48  ;;  %v241_v5 = vrot.slane %v240_v61, 4  ;;  %v301_v6 = vrot.slane %v300_v62, 4  ;;  %v371_v51 = vpop.permute.xlu1 %370 }
  0xef   :  { %v249_v7 = vadd.f32 %v248_v55, %v247_v53  ;;  %v309_v8 = vadd.f32 %v308_v57, %v307_v54  ;;  %v231_v11 = vadd.f32 %v223_v44, %v215_v35  ;;  %v292_v12 = vsub.f32 %v276_v37, %v284_v46 }
  0xf0   :  { %v236_v24 = vrot.slane %v235_v63, 2  ;;  %v296_v17 = vrot.slane %v295_v4, 2  ;;  %v242_v27 = vadd.f32 %v241_v5, %v240_v61  ;;  %v302_v18 = vadd.f32 %v301_v6, %v300_v62 }
  0xf1   :  { %v250_v30 = vrot.slane %v249_v7, 2  ;;  %v310_v31 = vrot.slane %v309_v8, 2  ;;  %v254_v32 = vsel %vm232_vm1, %v231_v11, 0.0  ;;  %v314_v22 = vsel %vm232_vm1, %v292_v12, 0.0 }
  0xf2   :  { %v243_v33 = vrot.slane %v242_v27, 2  ;;  %v303_v34 = vrot.slane %v302_v18, 2  ;;  %v255_v38 = vrot.slane %v254_v32, 4  ;;  %v315_v39 = vrot.slane %v314_v22, 4 }
  0xf3   :  { %v297_v23 = vadd.f32 %v296_v17, %v295_v4  ;;  %v311_v40 = vadd.f32 %v310_v31, %v309_v8  ;;  %v237_v42 = vadd.f32 %v236_v24, %v235_v63  ;;  %v251_v35 = vadd.f32 %v250_v30, %v249_v7  ;;  %v427_v17 = vpop.permute.xlu1 %426 }
  0xf4   :  { %v244_v37 = vadd.f32 %v243_v33, %v242_v27  ;;  %v304_v43 = vadd.f32 %v303_v34, %v302_v18  ;;  %v256_v44 = vadd.f32 %v255_v38, %v254_v32  ;;  %v316_v46 = vadd.f32 %v315_v39, %v314_v22 }
  0xf5   :  { %v298_v47 = vrot.slane %v297_v23, 1  ;;  %v312_v48 = vrot.slane %v311_v40, 1  ;;  %v238_v49 = vrot.slane %v237_v42, 1  ;;  %v252_v50 = vrot.slane %v251_v35, 1 }
  0xf6   :  { %v257_v52 = vrot.slane %v256_v44, 2  ;;  %v317_v53 = vrot.slane %v316_v46, 2  ;;  %v305_v54 = vrot.slane %v304_v43, 1  ;;  %v245_v55 = vrot.slane %v244_v37, 1 }
  0xf7   :  { %v299_v57 = vadd.f32 %v298_v47, %v297_v23  ;;  %v313_v61 = vadd.f32 %v312_v48, %v311_v40  ;;  %v239_v62 = vadd.f32 %v238_v49, %v237_v42  ;;  %v253_v4 = vadd.f32 %v252_v50, %v251_v35 }
  0xf8   :  { %v258_v5 = vadd.f32 %v257_v52, %v256_v44  ;;  %v318_v63 = vadd.f32 %v317_v53, %v316_v46  ;;  %v306_v6 = vadd.f32 %v305_v54, %v304_v43  ;;  %v246_v7 = vadd.f32 %v245_v55, %v244_v37  ;;  %v431_v54 = vpop.permute.xlu1 %430 }
  0xf9   :  { %v373_v8 = vmul.f32 %v814_v10, %v299_v57  ;;  %v375_v11 = vmul.f32 %v814_v10, %v313_v61  ;;  %v377_v12 = vmul.f32 %v843_v41, %v299_v57  ;;  %v379_v24 = vmul.f32 %v843_v41, %v313_v61 }
  0xfa   :  { %v319_v27 = vrot.slane %v318_v63, 1  ;;  %v374_v18 = vmul.f32 %v814_v10, %v306_v6  ;;  %v378_v30 = vmul.f32 %v843_v41, %v306_v6  ;;  %v381_v31 = vmul.f32 %v367_v20, %v299_v57 }
  0xfb   :  { %v382_v32 = vmul.f32 %v367_v20, %v306_v6  ;;  %v383_v22 = vmul.f32 %v367_v20, %v313_v61  ;;  %v259_v33 = vrot.slane %v258_v5, 1  ;;  %v341_v34 = vmul.f32 %v785_v15, %v239_v62 }
  0xfc   :  { %v320_v38 = vadd.f32 %v319_v27, %v318_v63  ;;  %v342_v39 = vmul.f32 %v785_v15, %v246_v7  ;;  %v343_v23 = vmul.f32 %v785_v15, %v253_v4  ;;  %v385_v40 = vmul.f32 %v371_v51, %v299_v57 }
  0xfd   :  { %v260_v42 = vadd.f32 %v259_v33, %v258_v5  ;;  %v862_v35 = vadd.f32 %v373_v8, %v341_v34  ;;  %v386_v37 = vmul.f32 %v371_v51, %v306_v6  ;;  %v387_v43 = vmul.f32 %v371_v51, %v313_v61 }
  0xfe   :  { %v376_v44 = vmul.f32 %v814_v10, %v320_v38  ;;  %v380_v46 = vmul.f32 %v843_v41, %v320_v38  ;;  %v384_v47 = vmul.f32 %v367_v20, %v320_v38  ;;  %v390_v48 = vadd.f32 %v374_v18, %v342_v39 }
  0xff   :  { %v344_v49 = vmul.f32 %v785_v15, %v260_v42  ;;  %v391_v50 = vadd.f32 %v375_v11, %v343_v23  ;;  %v388_v52 = vmul.f32 %v371_v51, %v320_v38  ;;  %v345_v53 = vmul.f32 %v787_v16, %v239_v62 }
 0x100   :  { %v346_v55 = vmul.f32 %v787_v16, %v246_v7  ;;  %v347_v57 = vmul.f32 %v787_v16, %v253_v4  ;;  %v348_v5 = vmul.f32 %v787_v16, %v260_v42  ;;  %v349_v61 = vmul.f32 %v789_v21, %v239_v62 }
 0x101   :  { %v392_v10 = vadd.f32 %v376_v44, %v344_v49  ;;  %v393_v63 = vadd.f32 %v377_v12, %v345_v53  ;;  %v350_v41 = vmul.f32 %v789_v21, %v246_v7  ;;  %v351_v20 = vmul.f32 %v789_v21, %v253_v4 }
 0x102   :  { %v394_v15 = vadd.f32 %v378_v30, %v346_v55  ;;  %v395_v6 = vadd.f32 %v379_v24, %v347_v57  ;;  %v396_v51 = vadd.f32 %v380_v46, %v348_v5  ;;  %v352_v8 = vmul.f32 %v789_v21, %v260_v42 }
 0x103   :  { %v875_v11 = vadd.f32 %v381_v31, %v349_v61  ;;  %v877_v27 = vadd.f32 %v382_v32, %v350_v41  ;;  %v879_v18 = vadd.f32 %v383_v22, %v351_v20  ;;  %v353_v16 = vmul.f32 %v795_v36, %v239_v62  ;;  %v495_v31 = vpop.permute.xlu1 %494 }
 0x104   :  { %v882_v33 = vadd.f32 %v384_v47, %v352_v8  ;;  %v354_v12 = vmul.f32 %v795_v36, %v246_v7  ;;  %v355_v34 = vmul.f32 %v795_v36, %v253_v4  ;;  %v356_v30 = vmul.f32 %v795_v36, %v260_v42 }
 0x105   :  { %v409_v24 = vmax.f32 %v393_v63, 0.0  ;;  %v410_v38 = vmax.f32 %v394_v15, 0.0  ;;  %v411_v39 = vmax.f32 %v395_v6, 0.0  ;;  %v412_v21 = vmax.f32 %v396_v51, 0.0 }
 0x106   :  { %v413_v32 = vmax.f32 %v875_v11, 0.0  ;;  %v414_v22 = vmax.f32 %v877_v27, 0.0  ;;  %v415_v23 = vmax.f32 %v879_v18, 0.0  ;;  %v416_v62 = vmax.f32 %v882_v33, 0.0 }
 0x107   :  { %v441_v44 = vmul.f32 %v427_v17, %v409_v24  ;;  %v442_v46 = vmul.f32 %v427_v17, %v410_v38  ;;  %v443_v7 = vmul.f32 %v427_v17, %v411_v39  ;;  %v444_v47 = vmul.f32 %v427_v17, %v412_v21  ;;  %v435_v15 = vpop.permute.xlu1 %434 }
 0x108   :  { %v445_v4 = vmul.f32 %v431_v54, %v413_v32  ;;  %v446_v49 = vmul.f32 %v431_v54, %v414_v22  ;;  %v447_v36 = vmul.f32 %v431_v54, %v415_v23  ;;  %v448_v42 = vmul.f32 %v431_v54, %v416_v62 }
 0x109   :  { %v509_v53 = vmul.f32 %v495_v31, %v409_v24  ;;  %v510_v55 = vmul.f32 %v495_v31, %v410_v38  ;;  %v511_v57 = vmul.f32 %v495_v31, %v411_v39  ;;  %v512_v5 = vmul.f32 %v495_v31, %v412_v21 }
 0x10a   :  { %v405_v61 = vmax.f32 %v862_v35, 0.0  ;;  %v406_v63 = vmax.f32 %v390_v48, 0.0  ;;  %v407_v41 = vmax.f32 %v391_v50, 0.0  ;;  %v408_v20 = vmax.f32 %v392_v10, 0.0 }
 0x10b   :  { %v401_v6 = vadd.f32 %v385_v40, %v353_v16  ;;  %v402_v51 = vadd.f32 %v386_v37, %v354_v12  ;;  %v403_v8 = vadd.f32 %v387_v43, %v355_v34  ;;  %v404_v11 = vadd.f32 %v388_v52, %v356_v30  ;;  %v503_v39 = vpop.permute.xlu1 %502 }
 0x10c   :  { %v437_v17 = vmul.f32 %v797_v45, %v405_v61  ;;  %v438_v27 = vmul.f32 %v797_v45, %v406_v63  ;;  %v439_v54 = vmul.f32 %v797_v45, %v407_v41  ;;  %v440_v18 = vmul.f32 %v797_v45, %v408_v20 }
 0x10d   :  { %v505_v33 = vmul.f32 %v799_v56, %v405_v61  ;;  %v506_v35 = vmul.f32 %v799_v56, %v406_v63  ;;  %v507_v48 = vmul.f32 %v799_v56, %v407_v41  ;;  %v508_v50 = vmul.f32 %v799_v56, %v408_v20 }
 0x10e   :  { %v453_v40 = vadd.f32 %v441_v44, %v437_v17  ;;  %v462_v37 = vadd.f32 %v442_v46, %v438_v27  ;;  %v471_v43 = vadd.f32 %v443_v7, %v439_v54  ;;  %v480_v52 = vadd.f32 %v444_v47, %v440_v18 }
 0x10f   :  { %v521_v10 = vadd.f32 %v509_v53, %v505_v33  ;;  %v530_v16 = vadd.f32 %v510_v55, %v506_v35  ;;  %v539_v12 = vadd.f32 %v511_v57, %v507_v48  ;;  %v548_v34 = vadd.f32 %v512_v5, %v508_v50 }
 0x110   :  { %v454_v30 = vadd.f32 %v453_v40, %v445_v4  ;;  %v463_v24 = vadd.f32 %v462_v37, %v446_v49  ;;  %v472_v38 = vadd.f32 %v471_v43, %v447_v36  ;;  %v481_v45 = vadd.f32 %v480_v52, %v448_v42 }
 0x111   :  { %v417_v21 = vmax.f32 %v401_v6, 0.0  ;;  %v418_v31 = vmax.f32 %v402_v51, 0.0  ;;  %v419_v61 = vmax.f32 %v403_v8, 0.0  ;;  %v420_v63 = vmax.f32 %v404_v11, 0.0 }
 0x112   :  { %v513_v41 = vmul.f32 %v803_v59, %v413_v32  ;;  %v514_v56 = vmul.f32 %v803_v59, %v414_v22  ;;  %v515_v44 = vmul.f32 %v803_v59, %v415_v23  ;;  %v516_v46 = vmul.f32 %v803_v59, %v416_v62 }
 0x113   :  { %v449_v7 = vmul.f32 %v435_v15, %v417_v21  ;;  %v450_v47 = vmul.f32 %v435_v15, %v418_v31  ;;  %v451_v53 = vmul.f32 %v435_v15, %v419_v61  ;;  %v452_v4 = vmul.f32 %v435_v15, %v420_v63 }
 0x114   :  { %v517_v49 = vmul.f32 %v503_v39, %v417_v21  ;;  %v518_v36 = vmul.f32 %v503_v39, %v418_v31  ;;  %v519_v42 = vmul.f32 %v503_v39, %v419_v61  ;;  %v520_v55 = vmul.f32 %v503_v39, %v420_v63 }
 0x115   :  { %v455_v57 = vadd.f32 %v454_v30, %v449_v7  ;;  %v464_v5 = vadd.f32 %v463_v24, %v450_v47  ;;  %v473_v20 = vadd.f32 %v472_v38, %v451_v53  ;;  %v482_v6 = vadd.f32 %v481_v45, %v452_v4 }
 0x116   :  { %v522_v51 = vadd.f32 %v521_v10, %v513_v41  ;;  %v531_v32 = vadd.f32 %v530_v16, %v514_v56  ;;  %v540_v8 = vadd.f32 %v539_v12, %v515_v44  ;;  %v549_v22 = vadd.f32 %v548_v34, %v516_v46 }
 0x117   :  { %v456_v11 = vrot.slane %v455_v57, 4  ;;  %v465_v23 = vrot.slane %v464_v5, 4  ;;  %v474_v17 = vrot.slane %v473_v20, 4  ;;  %v483_v59 = vrot.slane %v482_v6, 4 }
 0x118   :  { %v523_v62 = vadd.f32 %v522_v51, %v517_v49  ;;  %v532_v27 = vadd.f32 %v531_v32, %v518_v36  ;;  %v541_v54 = vadd.f32 %v540_v8, %v519_v42  ;;  %v550_v15 = vadd.f32 %v549_v22, %v520_v55 }
 0x119   :  { %v457_v18 = vadd.f32 %v456_v11, %v455_v57  ;;  %v466_v33 = vadd.f32 %v465_v23, %v464_v5  ;;  %v475_v35 = vadd.f32 %v474_v17, %v473_v20  ;;  %v484_v48 = vadd.f32 %v483_v59, %v482_v6 }
 0x11a   :  { %v524_v50 = vrot.slane %v523_v62, 4  ;;  %v533_v40 = vrot.slane %v532_v27, 4  ;;  %v542_v37 = vrot.slane %v541_v54, 4  ;;  %v551_v43 = vrot.slane %v550_v15, 4 }
 0x11b   :  { %v458_v52 = vrot.slane %v457_v18, 2  ;;  %v467_v10 = vrot.slane %v466_v33, 2  ;;  %v476_v16 = vrot.slane %v475_v35, 2  ;;  %v485_v12 = vrot.slane %v484_v48, 2 }
 0x11c   :  { %v525_v34 = vadd.f32 %v524_v50, %v523_v62  ;;  %v534_v30 = vadd.f32 %v533_v40, %v532_v27  ;;  %v543_v24 = vadd.f32 %v542_v37, %v541_v54  ;;  %v552_v38 = vadd.f32 %v551_v43, %v550_v15 }
 0x11d   :  { %v459_v45 = vadd.f32 %v458_v52, %v457_v18  ;;  %v468_v39 = vadd.f32 %v467_v10, %v466_v33  ;;  %v477_v21 = vadd.f32 %v476_v16, %v475_v35  ;;  %v486_v31 = vadd.f32 %v485_v12, %v484_v48 }
 0x11e   :  { %v526_v61 = vrot.slane %v525_v34, 2  ;;  %v535_v63 = vrot.slane %v534_v30, 2  ;;  %v544_v41 = vrot.slane %v543_v24, 2  ;;  %v553_v56 = vrot.slane %v552_v38, 2 }
 0x11f   :  { %v460_v44 = vrot.slane %v459_v45, 1  ;;  %v469_v46 = vrot.slane %v468_v39, 1  ;;  %v478_v7 = vrot.slane %v477_v21, 1  ;;  %v487_v47 = vrot.slane %v486_v31, 1 }
 0x120   :  { %v527_v53 = vadd.f32 %v526_v61, %v525_v34  ;;  %v536_v4 = vadd.f32 %v535_v63, %v534_v30  ;;  %v545_v49 = vadd.f32 %v544_v41, %v543_v24  ;;  %v554_v36 = vadd.f32 %v553_v56, %v552_v38 }
 0x121   :  { %v461_v42 = vadd.f32 %v460_v44, %v459_v45  ;;  %v470_v55 = vadd.f32 %v469_v46, %v468_v39  ;;  %v479_v57 = vadd.f32 %v478_v7, %v477_v21  ;;  %v488_v5 = vadd.f32 %v487_v47, %v486_v31 }
 0x122   :  { %v528_v20 = vrot.slane %v527_v53, 1  ;;  %v537_v6 = vrot.slane %v536_v4, 1  ;;  %v546_v51 = vrot.slane %v545_v49, 1  ;;  %v555_v32 = vrot.slane %v554_v36, 1 }
 0x123   :  { %v558_v8 = vmul.f32 %v470_v55, %v826_v25  ;;  %v559_v22 = vmul.f32 %v479_v57, %v819_v13  ;;  %v560_v11 = vmul.f32 %v488_v5, %v833_v28  ;;  %v557_v23 = vmul.f32 %v461_v42, %v812_v9 }
 0x124   :  { %v529_v17 = vadd.f32 %v528_v20, %v527_v53  ;;  %v538_v59 = vadd.f32 %v537_v6, %v536_v4  ;;  %v547_v62 = vadd.f32 %v546_v51, %v545_v49  ;;  %v556_v27 = vadd.f32 %v555_v32, %v554_v36 }
 0x125   :  { %v585_v54 = vrot.slane %v557_v23, 4  ;;  %v586_v15 = vrot.slane %v558_v8, 4  ;;  %v587_v18 = vrot.slane %v559_v22, 4  ;;  %v588_v33 = vrot.slane %v560_v11, 4 }
 0x126   :  { %v562_v35 = vmul.f32 %v538_v59, %v826_v25  ;;  %v563_v48 = vmul.f32 %v547_v62, %v819_v13  ;;  %v564_v50 = vmul.f32 %v556_v27, %v833_v28  ;;  %v561_v40 = vmul.f32 %v529_v17, %v812_v9 }
 0x127   :  { %v627_v37 = vrot.slane %v835_v29, %v603_v60  ;;  %v631_v43 = vrot.slane %v835_v29, %v630_v14  ;;  %v635_v52 = vrot.slane %v835_v29, %v634_v19  ;;  %v639_v13 = vrot.slane %v835_v29, %v638_v26 }
 0x128   :  { %v569_v25 = vrot.slane %v561_v40, 4  ;;  %v593_v28 = vadd.f32 %v585_v54, %v561_v40  ;;  %v570_v10 = vrot.slane %v562_v35, 4  ;;  %v571_v9 = vrot.slane %v563_v48, 4 }
 0x129   :  { %v572_v16 = vrot.slane %v564_v50, 4  ;;  %v594_v12 = vadd.f32 %v586_v15, %v562_v35  ;;  %v595_v34 = vadd.f32 %v587_v18, %v563_v48  ;;  %v596_v60 = vadd.f32 %v588_v33, %v564_v50 }
 0x12a   :  { %v577_v30 = vsub.f32 %v557_v23, %v569_v25  ;;  %v611_v24 = vrot.slane %v593_v28, 4  ;;  %v578_v38 = vsub.f32 %v558_v8, %v570_v10  ;;  %v579_v14 = vsub.f32 %v559_v22, %v571_v9 }
 0x12b   :  { %v580_v45 = vsub.f32 %v560_v11, %v572_v16  ;;  %v612_v39 = vrot.slane %v594_v12, 4  ;;  %v613_v21 = vrot.slane %v595_v34, 4  ;;  %v614_v19 = vrot.slane %v596_v60, 4 }
 0x12c   :  { %v619_v58 = vsel %vm232_vm1, %v577_v30, %v611_v24 }
 0x12d   :  { %v644_v31 = vmul.f32 %v627_v37, %v619_v58  ;;  %v620_v26 = vsel %vm232_vm1, %v578_v38, %v612_v39  ;;  %v621_v29 = vsel %vm232_vm1, %v579_v14, %v613_v21  ;;  %v622_v61 = vsel %vm232_vm1, %v580_v45, %v614_v19 }
 0x12e   :  { %v645_v63 = vmul.f32 %v631_v43, %v620_v26  ;;  %v646_v41 = vmul.f32 %v635_v52, %v621_v29  ;;  %v647_v56 = vmul.f32 %v639_v13, %v622_v61 }
 0x12f   :  { %v648_v44 = vsub.f32 %v756_v2, %v644_v31 }
 0x130   :  { %v649_v46 = vsub.f32 %v746_v0, %v645_v63  ;;  %v650_v7 = vsub.f32 %v763_v3, %v646_v41  ;;  %v651_v47 = vsub.f32 %v751_v1, %v647_v56 }
 0x131   :  { %652 = vst [vmem:[#allocation2] sm:$0xff] %v648_v44 }
 0x132   :  { %653 = vst [vmem:[#allocation2 + $0x8] sm:$0xff] %v649_v46  ;;  %654 = vst [vmem:[#allocation2 + $0x10] sm:$0xff] %v650_v7 }
 0x133   :  { %655 = vst [vmem:[#allocation2 + $0x18] sm:$0xff] %v651_v47 }
 0x134   :  { %706 = shalt.err (!%p703_p4)
}
 0x135   :  { %665 = dma.vmem_to_hbm [thread:$0]  %s663_s5, 512, %s938_s3, [#allocation3]  }
 0x136   :  { %715 = dma.done.wait [#allocation3], 512  }
 0x137   :  { %716 = vsyncadd [#allocation3], 4294966784 }
 0x138   :  { %669 = vsyncpa [#allocation3], 1 }

</bundles_post_ra>
